<compile_context>
chip_gen: v7x
topology: tpu7x:2x2x1
jax: 0.10.0
libtpu: 0.0.40
codegen_flags: <defaults>
</compile_context>

<pallas_src>
import math

import jax
import jax.numpy as jnp
from jax import lax
from jax.experimental import pallas as pl
from jax.experimental.pallas import tpu as pltpu


# ----------------------------------------------------------------------------
# FiLM generator: 3-layer MLP with sigmoid activations (fused)
# ----------------------------------------------------------------------------

# Contract the last dim of the activations with the last dim of the torch-layout
# (out, in) weights: (B, in) x (out, in) -> (B, out). No transposes anywhere.
_DN_LAST_LAST = (((1,), (1,)), ((), ()))


def _film_generator_kernel(x_ref, w1_ref, b1_ref, w2_ref, b2_ref, w3_ref, b3_ref, o_ref):
    x = x_ref[...].astype(jnp.float32)

    h = lax.dot_general(x, w1_ref[...], _DN_LAST_LAST,
                        preferred_element_type=jnp.float32) + b1_ref[...]
    h = jax.nn.sigmoid(h)

    h = lax.dot_general(h, w2_ref[...], _DN_LAST_LAST,
                        preferred_element_type=jnp.float32) + b2_ref[...]
    h = jax.nn.sigmoid(h)

    h = lax.dot_general(h, w3_ref[...], _DN_LAST_LAST,
                        preferred_element_type=jnp.float32) + b3_ref[...]
    h = jax.nn.sigmoid(h)

    o_ref[...] = h.astype(o_ref.dtype)


def film_generator(x, params, w_shared=None):
    """Forward pass of FiLMgenerator.

    Args:
      x: (B, n_features) conditioning input.
      params: dict with torch-layout weights:
        w1 (n_hid, n_features), b1 (n_hid,)
        w2 (n_hid//4, n_hid),   b2 (n_hid//4,)
        w3 (2*n_channels, n_hid//4), b3 (2*n_channels,)
      w_shared: optional [w1, w2] overriding the first two weights
        (mirrors the PyTorch shared_weights mechanism).

    Returns:
      (film_params (B, 2*n_channels), [w1, w2])
    """
    w1 = w_shared[0] if w_shared is not None else params["w1"]
    w2 = w_shared[1] if w_shared is not None else params["w2"]
    b1, b2 = params["b1"], params["b2"]
    w3, b3 = params["w3"], params["b3"]

    B, F = x.shape
    H = w1.shape[0]
    H4 = w2.shape[0]
    O = w3.shape[0]

    # Biases kept 2-D (1, out) so they sit cleanly in a vreg tile and broadcast.
    b1k = b1.reshape(1, H)
    b2k = b2.reshape(1, H4)
    b3k = b3.reshape(1, O)

    operands = (x, w1, b1k, w2, b2k, w3, b3k)
    vmem = pl.BlockSpec(memory_space=pltpu.MemorySpace.VMEM)

    if B <= 512:
        # Tiny problem: no grid, no pipeline scaffolding — whole-array VMEM blocks.
        out = pl.pallas_call(
            _film_generator_kernel,
            out_shape=jax.ShapeDtypeStruct((B, O), x.dtype),
            in_specs=[vmem] * 7,
            out_specs=vmem,
        )(*operands)
    else:
        # Large batch: tile the batch axis; the (tiny) weights/biases stay
        # VMEM-resident across grid steps (constant index_map).
        TB = 512
        out = pl.pallas_call(
            _film_generator_kernel,
            out_shape=jax.ShapeDtypeStruct((B, O), x.dtype),
            grid=(pl.cdiv(B, TB),),
            in_specs=[
                pl.BlockSpec((TB, F), lambda i: (i, 0)),
                pl.BlockSpec((H, F), lambda i: (0, 0)),
                pl.BlockSpec((1, H), lambda i: (0, 0)),
                pl.BlockSpec((H4, H), lambda i: (0, 0)),
                pl.BlockSpec((1, H4), lambda i: (0, 0)),
                pl.BlockSpec((O, H4), lambda i: (0, 0)),
                pl.BlockSpec((1, O), lambda i: (0, 0)),
            ],
            out_specs=pl.BlockSpec((TB, O), lambda i: (i, 0)),
            compiler_params=pltpu.CompilerParams(
                dimension_semantics=("parallel",)),
        )(*operands)

    return out, [w1, w2]


# ----------------------------------------------------------------------------
# FiLM modulation: out = gamma * feature_maps + beta
# ----------------------------------------------------------------------------

def _film_modulation_kernel(fm_ref, g_ref, b_ref, o_ref):
    fm = fm_ref[...].astype(jnp.float32)
    g = g_ref[...].astype(jnp.float32)   # (rows, 1) -> lane broadcast
    b = b_ref[...].astype(jnp.float32)
    o_ref[...] = (g * fm + b).astype(o_ref.dtype)


def _film_modulate(fm2d, gammas, betas):
    """fm2d: (R, S) lane-dense view; gammas/betas: (R, 1)."""
    R, S = fm2d.shape
    vmem = pl.BlockSpec(memory_space=pltpu.MemorySpace.VMEM)

    if R <= 512 and S <= 2048:
        # Small enough for a single full-VMEM block; skip the grid entirely.
        return pl.pallas_call(
            _film_modulation_kernel,
            out_shape=jax.ShapeDtypeStruct((R, S), fm2d.dtype),
            in_specs=[vmem, vmem, vmem],
            out_specs=vmem,
        )(fm2d, gammas, betas)

    TR = R if R <= 512 else 256        # sublane tile (multiple of 8 when tiled)
    TS = S if S <= 2048 else 2048      # lane tile (multiple of 128 when tiled)
    # VMEM footprint: 2 bufs x (in + out) x TR*TS*4B = 8 MiB max — fits the
    # 32 MiB scoped default on all of v5e/v6e/v7x.
    return pl.pallas_call(
        _film_modulation_kernel,
        out_shape=jax.ShapeDtypeStruct((R, S), fm2d.dtype),
        grid=(pl.cdiv(R, TR), pl.cdiv(S, TS)),
        in_specs=[
            pl.BlockSpec((TR, TS), lambda i, j: (i, j)),
            pl.BlockSpec((TR, 1), lambda i, j: (i, 0)),
            pl.BlockSpec((TR, 1), lambda i, j: (i, 0)),
        ],
        out_specs=pl.BlockSpec((TR, TS), lambda i, j: (i, j)),
        compiler_params=pltpu.CompilerParams(
            dimension_semantics=("parallel", "parallel")),
    )(fm2d, gammas, betas)


def film_layer(feature_maps, context, params, w_shared=None):
    """Forward pass of FiLMlayer.

    Args:
      feature_maps: (B, C, H, W) or (B, C, H, W, D) activations.
      context: (B, n_metadata) conditioning input.
      params: FiLMgenerator parameters (see film_generator).
      w_shared: optional shared [w1, w2].

    Returns:
      (modulated feature maps, new_w_shared) — same as the PyTorch module.
    """
    shape = feature_maps.shape
    if len(shape) not in (4, 5):
        raise ValueError(
            "Data should be either 2D (tensor length: 4) or 3D (tensor length: 5), "
            "found shape: {}".format(shape))

    B, C = shape[0], shape[1]
    S = 1
    for d in shape[2:]:
        S *= d

    # FiLM generator MLP (fused kernel).
    film_params, new_w_shared = film_generator(context, params, w_shared)  # (B, 2C)

    # gamma = first C params, beta = last C params (per the PyTorch slicing);
    # one value per (batch, channel) row of the flattened feature maps.
    gammas = film_params[:, :C].reshape(B * C, 1)
    betas = film_params[:, C:].reshape(B * C, 1)

    fm2d = feature_maps.reshape(B * C, S)       # lane-dense, contiguous (free reshape)
    out2d = _film_modulate(fm2d, gammas, betas)
    return out2d.reshape(shape), new_w_shared


# ----------------------------------------------------------------------------
# Parameter init + pure-JAX reference
# ----------------------------------------------------------------------------

def init_params(key, n_features, n_channels, n_hid=64, dtype=jnp.float32):
    """Deterministic init mimicking nn.Linear's default uniform(-1/sqrt(in), 1/sqrt(in))."""
    dims = [
        ("w1", "b1", n_features, n_hid),
        ("w2", "b2", n_hid, n_hid // 4),
        ("w3", "b3", n_hid // 4, n_channels * 2),
    ]
    params = {}
    for wname, bname, d_in, d_out in dims:
        key, kw, kb = jax.random.split(key, 3)
        bound = 1.0 / math.sqrt(d_in)
        params[wname] = jax.random.uniform(
            kw, (d_out, d_in), dtype=dtype, minval=-bound, maxval=bound)
        params[bname] = jax.random.uniform(
            kb, (d_out,), dtype=dtype, minval=-bound, maxval=bound)
    return params


def _reference_film_layer(feature_maps, context, params):
    """Pure-JAX reference of the PyTorch FiLMlayer forward."""
    h = jax.nn.sigmoid(context @ params["w1"].T + params["b1"])
    h = jax.nn.sigmoid(h @ params["w2"].T + params["b2"])
    fp = jax.nn.sigmoid(h @ params["w3"].T + params["b3"])          # (B, 2C)
    C = feature_maps.shape[1]
    extra = (1,) * (feature_maps.ndim - 2)
    gammas = fp[:, :C].reshape(fp.shape[0], C, *extra)
    betas = fp[:, C:].reshape(fp.shape[0], C, *extra)
    return gammas * feature_maps + betas, fp


if __name__ == "__main__":
    key = jax.random.PRNGKey(0)
    batch, n_channels, height, width = 2, 4, 16, 16
    n_metadata, n_hid = 16, 64

    kf, kc, kp = jax.random.split(key, 3)
    feature_maps = jax.random.normal(
        kf, (batch, n_channels, height, width), dtype=jnp.float32)
    context = jax.random.normal(kc, (batch, n_metadata), dtype=jnp.float32)
    params = init_params(kp, n_metadata, n_channels, n_hid)

    out, new_w_shared = film_layer(feature_maps, context, params, w_shared=None)
    out = jax.block_until_ready(out)

    ref_out, ref_fp = _reference_film_layer(feature_maps, context, params)
    assert out.shape == feature_maps.shape, out.shape
    assert jnp.allclose(out, ref_out, atol=1e-5, rtol=1e-5), "mismatch vs reference"
    assert new_w_shared[0].shape == (n_hid, n_metadata)
    assert new_w_shared[1].shape == (n_hid // 4, n_hid)

    # Also sanity-check the shared-weights path (mirrors PyTorch semantics).
    out2, _ = film_layer(feature_maps, context, params,
                         w_shared=[params["w1"], params["w2"]])
    out2 = jax.block_until_ready(out2)
    assert jnp.allclose(out2, ref_out, atol=1e-5, rtol=1e-5)

    print("KERNEL_OK")
</pallas_src>

<mosaic_0001>
module attributes {stable_mosaic.version = 11 : i64} {
  func.func @_film_generator_kernel(%arg0: memref<2x16xf32, #tpu.memory_space<vmem>>, %arg1: memref<64x16xf32, #tpu.memory_space<vmem>>, %arg2: memref<1x64xf32, #tpu.memory_space<vmem>>, %arg3: memref<16x64xf32, #tpu.memory_space<vmem>>, %arg4: memref<1x16xf32, #tpu.memory_space<vmem>>, %arg5: memref<8x16xf32, #tpu.memory_space<vmem>>, %arg6: memref<1x8xf32, #tpu.memory_space<vmem>>, %arg7: memref<2x8xf32, #tpu.memory_space<vmem>>) attributes {dimension_semantics = [], scalar_prefetch = 0 : i64, scratch_operands = 0 : i64, tpu.core_type = #tpu.core_type<tc>} {
    %c0 = arith.constant 0 : index
    %c0_0 = arith.constant 0 : index
    %0 = vector.load %arg0[%c0, %c0_0] : memref<2x16xf32, #tpu.memory_space<vmem>>, vector<2x16xf32>
    %c0_1 = arith.constant 0 : index
    %c0_2 = arith.constant 0 : index
    %1 = vector.load %arg1[%c0_1, %c0_2] : memref<64x16xf32, #tpu.memory_space<vmem>>, vector<64x16xf32>
    %cst = arith.constant dense<0.000000e+00> : vector<2x64xf32>
    %2 = tpu.matmul %0, %1, %cst {dimension_numbers = #tpu.dot_dimension_numbers<[1], [1], [0], [0], [0, 0, 1, 0], [], []>} : vector<2x16xf32>, vector<64x16xf32>, vector<2x64xf32> -> vector<2x64xf32>
    %c0_3 = arith.constant 0 : index
    %c0_4 = arith.constant 0 : index
    %3 = vector.load %arg2[%c0_3, %c0_4] : memref<1x64xf32, #tpu.memory_space<vmem>>, vector<1x64xf32>
    %4 = vector.broadcast %3 : vector<1x64xf32> to vector<2x64xf32>
    %5 = arith.addf %2, %4 : vector<2x64xf32>
    %6 = arith.negf %5 : vector<2x64xf32>
    %7 = math.exp %6 : vector<2x64xf32>
    %cst_5 = arith.constant 1.000000e+00 : f32
    %8 = vector.broadcast %cst_5 : f32 to vector<2x64xf32>
    %9 = arith.addf %8, %7 : vector<2x64xf32>
    %10 = arith.divf %8, %9 : vector<2x64xf32>
    %c0_6 = arith.constant 0 : index
    %c0_7 = arith.constant 0 : index
    %11 = vector.load %arg3[%c0_6, %c0_7] : memref<16x64xf32, #tpu.memory_space<vmem>>, vector<16x64xf32>
    %cst_8 = arith.constant dense<0.000000e+00> : vector<2x16xf32>
    %12 = tpu.matmul %10, %11, %cst_8 {dimension_numbers = #tpu.dot_dimension_numbers<[1], [1], [0], [0], [0, 0, 1, 0], [], []>} : vector<2x64xf32>, vector<16x64xf32>, vector<2x16xf32> -> vector<2x16xf32>
    %c0_9 = arith.constant 0 : index
    %c0_10 = arith.constant 0 : index
    %13 = vector.load %arg4[%c0_9, %c0_10] : memref<1x16xf32, #tpu.memory_space<vmem>>, vector<1x16xf32>
    %14 = vector.broadcast %13 : vector<1x16xf32> to vector<2x16xf32>
    %15 = arith.addf %12, %14 : vector<2x16xf32>
    %16 = arith.negf %15 : vector<2x16xf32>
    %17 = math.exp %16 : vector<2x16xf32>
    %cst_11 = arith.constant 1.000000e+00 : f32
    %18 = vector.broadcast %cst_11 : f32 to vector<2x16xf32>
    %19 = arith.addf %18, %17 : vector<2x16xf32>
    %20 = arith.divf %18, %19 : vector<2x16xf32>
    %c0_12 = arith.constant 0 : index
    %c0_13 = arith.constant 0 : index
    %21 = vector.load %arg5[%c0_12, %c0_13] : memref<8x16xf32, #tpu.memory_space<vmem>>, vector<8x16xf32>
    %cst_14 = arith.constant dense<0.000000e+00> : vector<2x8xf32>
    %22 = tpu.matmul %20, %21, %cst_14 {dimension_numbers = #tpu.dot_dimension_numbers<[1], [1], [0], [0], [0, 0, 1, 0], [], []>} : vector<2x16xf32>, vector<8x16xf32>, vector<2x8xf32> -> vector<2x8xf32>
    %c0_15 = arith.constant 0 : index
    %c0_16 = arith.constant 0 : index
    %23 = vector.load %arg6[%c0_15, %c0_16] : memref<1x8xf32, #tpu.memory_space<vmem>>, vector<1x8xf32>
    %24 = vector.broadcast %23 : vector<1x8xf32> to vector<2x8xf32>
    %25 = arith.addf %22, %24 : vector<2x8xf32>
    %26 = arith.negf %25 : vector<2x8xf32>
    %27 = math.exp %26 : vector<2x8xf32>
    %cst_17 = arith.constant 1.000000e+00 : f32
    %28 = vector.broadcast %cst_17 : f32 to vector<2x8xf32>
    %29 = arith.addf %28, %27 : vector<2x8xf32>
    %30 = arith.divf %28, %29 : vector<2x8xf32>
    %c0_18 = arith.constant 0 : index
    %c0_19 = arith.constant 0 : index
    %31 = vector.load %arg7[%c0_18, %c0_19] : memref<2x8xf32, #tpu.memory_space<vmem>>, vector<2x8xf32>
    tpu.vector_store %arg7[%c0_18, %c0_19], %30 {strides = array<i32>} : memref<2x8xf32, #tpu.memory_space<vmem>>, vector<2x8xf32>,
    return
  }
}

</mosaic_0001>

<bundles_post_ra>
// kernel: tpu_custom_call.1
= control target key start
LH: loop header
LB: loop body
LE: loop exit
PB: predicated region body
PF: predicated region fallthrough
CT: control target
= control target key end

     0   :  { %vm43_vm0 = vcmask 130048   ;;  %v473_v2 = vmov 0.0|0.0   ;;  %vm474_vm2 = vmmov 0   ;;  %v475_v5 = vmov 0.0   ;;  %s594_s0 = inlined_call_operand.vmem [shape: f32[2,16], index: 0, kind: input, shape index: {}]   ;;  %s595_s1 = inlined_call_operand.vmem [shape: f32[64,16], index: 1, kind: input, shape index: {}]   ;;  %s596_s2 = inlined_call_operand.vmem [shape: f32[1,64], index: 2, kind: input, shape index: {}]   ;;  %s597_s3 = inlined_call_operand.vmem [shape: f32[16,64], index: 3, kind: input, shape index: {}]   ;;  %s598_s4 = inlined_call_operand.vmem [shape: f32[1,16], index: 4, kind: input, shape index: {}]   ;;  %s599_s5 = inlined_call_operand.vmem [shape: f32[8,16], index: 5, kind: input, shape index: {}]   ;;  %s600_s6 = inlined_call_operand.vmem [shape: f32[1,8], index: 6, kind: input, shape index: {}]   ;;  %s601_s7 = inlined_call_operand.hbm [shape: f32[2,8], index: 7, kind: output, shape index: {}]  }
   0x1   :  { %v28_v0 = vld [vmem:[%s595_s1] sm:$0xff]  ;;  %v29_v1 = vld [vmem:[%s595_s1 + $0x8] sm:$0xff]  ;;  %413 = vmatprep.subr.bf16.mxu0 %v473_v2  ;;  %vm525_vm1 = vmpackc.low %vm43_vm0, %vm43_vm0  ;;  %429 = vmatprep.subr.bf16.mxu1 %v473_v2 }
   0x2   :  { %v414_v3 = vpack.c.bf16 %v29_v1, %v28_v0  ;;  %398 = vmatprep.mubr.msk.f32.mxu0 %vm474_vm2, %v475_v5  ;;  %405 = vmatprep.mubr.msk.f32.mxu1 %vm474_vm2, %v475_v5 }
   0x4   :  { %416 = vmatpush3.bf16.xpose.msk.msra.mxu0 %vm525_vm1, %v414_v3 }
   0x5   :  { %12 = vsyncpa [#allocation3], 0  ;;  %417 = vmatprep.subr.bf16.mxu0 %v473_v2  ;;  %v30_v6 = vld [vmem:[%s595_s1 + $0x10] sm:$0xff]  ;;  %v31_v7 = vld [vmem:[%s595_s1 + $0x18] sm:$0xff]  ;;  %vm156_vm3 = vcmask 523264   ;;  %vm332_vm5 = vcmask 58368  }
   0x6   :  { %v418_v8 = vpack.c.bf16 %v31_v7, %v30_v6  ;;  %v32_v9 = vld [vmem:[%s595_s1 + $0x20] sm:$0xff]  ;;  %v33_v10 = vld [vmem:[%s595_s1 + $0x28] sm:$0xff]  ;;  %v34_v12 = vld [vmem:[%s595_s1 + $0x30] sm:$0xff] }
   0x7   :  { %v422_v11 = vpack.c.bf16 %v33_v10, %v32_v9  ;;  %v35_v13 = vld [vmem:[%s595_s1 + $0x38] sm:$0xff]  ;;  %v27_v15 = vld [vmem:[%s594_s0] sm:$0x3]  ;;  %v148_v17 = vld [vmem:[%s597_s3 + $0x8] sm:$0xff] }
   0x8   :  { %v426_v14 = vpack.c.bf16 %v35_v13, %v34_v12  ;;  %v147_v16 = vld [vmem:[%s597_s3] sm:$0xff]  ;;  %vm431_vm4 = vmpackc.low %vm156_vm3, %vm156_vm3 }
   0x9   :  { %v430_v18 = vpack.c.bf16 %v148_v17, %v147_v16  ;;  %v348_v19 = vld [vmem:[%s596_s2] ss:$0 sm:$0xff] }
   0xa   :  { %v242_v27 = vld [vmem:[%s599_s5] sm:$0xff] }
   0xb   :  { %432 = vmatpush3.bf16.xpose.msk.msra.mxu1 %vm431_vm4, %v430_v18  ;;  %v359_v28 = vld [vmem:[%s598_s4] ss:$0 sm:$0xff]  ;;  %s476_s4 = smov [#allocation2]  }
   0xc   :  { %420 = vmatpush3.bf16.xpose.msk.msra.mxu0 %vm525_vm1, %v418_v8  ;;  %408 = vmatprep.subr.mxu1 %v475_v5  ;;  %v364_v36 = vld [vmem:[%s600_s6] ss:$0 sm:$0xff]  ;;  %s340_s5 = sshll.u32 %s476_s4, 4  ;;  %s341_s5 = int_to_ptr.vmem [resolvable:$true] %s340_s5 }
   0xd   :  { %421 = vmatprep.subr.bf16.mxu0 %v473_v2  ;;  %s449_s27 = scalar_lea.vmem %s341_s5, 32  ;;  %p454_p1 = scmp.lt.s32.totalorder %s341_s5, %s341_s5 }
   0xe   :  { %p450_p0 = scmp.ne.s32.totalorder %s341_s5, %s449_s27  ;;  %p455_p2 = scmp.lt.s32.totalorder %s449_s27, %s449_s27 }
  0x10   :  { %p456_p3 = por %p455_p2, %p454_p1 }
  0x12   :  { %p457_p4 = pnand %p456_p3, %p450_p0 }
  0x14   :  { %424 = vmatpush3.bf16.xpose.msk.msra.mxu0 %vm525_vm1, %v422_v11 }
  0x15   :  { %425 = vmatprep.subr.bf16.mxu0 %v473_v2 }
  0x1c   :  { %428 = vmatpush3.bf16.xpose.msk.msra.mxu0 %vm525_vm1, %v426_v14 }
  0x23   :  { %399 = vmatmul.mubr.msk.f32.vlgmr.msra.gmra.mrb[0].mxu0 %vm43_vm0, %v27_v15 }
  0xf6   :  { %v137_v20 = vpop.f32.mrb[0].mxu0 }
  0xf7   :  { %v138_v21 = vadd.f32 %v348_v19, %v137_v20  ;;  %v400_v22 = vpop.f32.mrb[1].mxu0 }
  0xf9   :  { %v358_v23 = vmul.f32 -1.442695, %v138_v21 }
  0xfb   :  { %437 = vpow2.f32 %v358_v23 }
 0x105   :  { %v438_v24 = vpop.eup %437 }
 0x106   :  { %v144_v25 = vadd.f32 1.0, %v438_v24 }
 0x108   :  { %439 = vrcp.f32 %v144_v25 }
 0x112   :  { %v440_v26 = vpop.eup %439 }
 0x113   :  { %406 = vmatmul.mubr.msk.f32.vlgmr.msra.gmra.mrb[0].mxu1 %vm156_vm3, %v440_v26 }
 0x114   :  { %410 = vmatprep.mubr.msk.f32.mxu1 %vm474_vm2, %v475_v5  ;;  %409 = vmatpush3.xpose.msk.msra.mxu1 %vm43_vm0, %v242_v27 }
 0x1e6   :  { %v232_v29 = vpop.f32.mrb[0].mxu1 }
 0x1e7   :  { %v233_v30 = vadd.f32 %v359_v28, %v232_v29  ;;  %v407_v31 = vpop.f32.mrb[1].mxu1 }
 0x1e9   :  { %v363_v32 = vmul.f32 -1.442695, %v233_v30 }
 0x1eb   :  { %441 = vpow2.f32 %v363_v32 }
 0x1f5   :  { %v442_v33 = vpop.eup %441 }
 0x1f6   :  { %v239_v34 = vadd.f32 1.0, %v442_v33 }
 0x1f8   :  { %443 = vrcp.f32 %v239_v34 }
 0x202   :  { %v444_v35 = vpop.eup %443 }
 0x203   :  { %411 = vmatmul.mubr.msk.f32.vlgmr.msra.gmra.mrb[2].mxu1 %vm43_vm0, %v444_v35 }
 0x2d6   :  { %v322_v37 = vpop.f32.mrb[2].mxu1 }
 0x2d7   :  { %v323_v38 = vadd.f32 %v364_v36, %v322_v37  ;;  %v412_v39 = vpop.f32.mrb[3].mxu1 }
 0x2d9   :  { %v367_v40 = vmul.f32 -1.442695, %v323_v38 }
 0x2db   :  { %445 = vpow2.f32 %v367_v40 }
 0x2e5   :  { %v446_v41 = vpop.eup %445 }
 0x2e6   :  { %v329_v42 = vadd.f32 1.0, %v446_v41 }
 0x2e8   :  { %447 = vrcp.f32 %v329_v42 }
 0x2f2   :  { %v448_v43 = vpop.eup %447 }
 0x2f3   :  { %333 = vst.msk [vmem:[#allocation2] sm:$0x3] %vm332_vm5, %v448_v43 }
 0x2f4   :  { %460 = shalt.err (!%p457_p4)
}
 0x2f5   :  { %s461_s29 = scalar_lea.hbm %s601_s7, 32 }
 0x2f6   :  { %p462_p5 = scmp.ne.s32.totalorder %s601_s7, %s461_s29  ;;  %p465_p6 = scmp.lt.u32.totalorder %s461_s29, %s601_s7 }
 0x2f8   :  { %p467_p7 = pnand %p465_p6, %p462_p5 }
 0x2fa   :  { %470 = shalt.err (!%p467_p7)
}
 0x2fb   :  { %343 = dma.vmem_to_hbm [thread:$0]  %s341_s5, 32, %s601_s7, [#allocation3]  }
 0x2fc   :  { %471 = dma.done.wait [#allocation3], 32  }
 0x2fd   :  { %472 = vsyncadd [#allocation3], 4294967264 }
 0x2fe   :  { %347 = vsyncpa [#allocation3], 1 }

</bundles_post_ra>
